<compile_context>
chip_gen: v6e
topology: v6e:2x2x1
jax: 0.10.0
libtpu: 0.0.40
codegen_flags: <defaults>
</compile_context>

<pallas_src>
import numpy as np
import jax
import jax.numpy as jnp
from jax.experimental import pallas as pl
from jax.experimental.pallas import tpu as pltpu


def _round_up(v: int, m: int) -> int:
    return -(-v // m) * m


def _adaptive_pool_matrix(in_size: int, out_size: int) -> np.ndarray:
    """Averaging matrix matching F.adaptive_avg_pool2d window rules
    (also correct for in_size < out_size, i.e. the 'upsampling' case)."""
    m = np.zeros((out_size, in_size), dtype=np.float32)
    for i in range(out_size):
        start = (i * in_size) // out_size
        end = -((-(i + 1) * in_size) // out_size)  # ceil((i+1)*in/out)
        m[i, start:end] = 1.0 / float(end - start)
    return m


def _make_kernel(G: int, Kp: int):
    def kernel(xw_ref, py_ref, pxt_ref, o_ref):
        # xw_ref : (Sy_p, W_p)      all images width-concatenated; constant
        #                           block index -> resident across grid steps.
        # py_ref : (G*Kp, Sy_p)     stacked zero-padded row-pool matrices.
        # pxt_ref: (G, W_p, O_p)    per-cutout block-diagonal col-pool matrices.
        # o_ref  : (G*Kp, O_p)      lane-dense output slab for this group.
        xw = xw_ref[...]

        # Stage 1: row pooling for G cutouts x all images in ONE MXU matmul.
        t = jnp.dot(py_ref[...], xw, preferred_element_type=jnp.float32)  # (G*Kp, W_p) f32

        # Stage 2: per cutout, ONE wide block-diagonal matmul; each (Kp, O_p)
        # slab is stored immediately (no concatenate -> no vreg spill traffic).
        for g in range(G):
            tg = t[g * Kp:(g + 1) * Kp, :].astype(jnp.bfloat16)
            piece = jnp.dot(tg, pxt_ref[g], preferred_element_type=jnp.float32)
            o_ref[g * Kp:(g + 1) * Kp, :] = piece.astype(o_ref.dtype)

    return kernel


def make_cutouts_pallas(x, params, cut_size):
    """x: (B, C, Sy, Sx) float32; params: [(size, offsety, offsetx), ...].

    Returns (cutn*B, C, cut_size, cut_size), cutout-major like torch.cat.
    """
    B, C, Sy, Sx = x.shape
    N = B * C
    K = cut_size
    cutn = len(params)

    # Padded problem dimensions (sublane=8, lane=128 alignment).
    Kp = _round_up(K, 8)
    Sy_p = _round_up(Sy, 8)
    W = N * Sx
    W_p = _round_up(W, 128)
    O = N * K
    O_p = _round_up(O, 128)

    # ---- host-side pooling operands (built in f32, shipped as bf16) --------
    py = np.zeros((cutn * Kp, Sy_p), dtype=np.float32)
    pxt = np.zeros((cutn, W_p, O_p), dtype=np.float32)
    for c, (size, oy, ox) in enumerate(params):
        a = _adaptive_pool_matrix(size, K)                      # (K, size)
        py[c * Kp:c * Kp + K, oy:oy + size] = a
        at = a.T                                                # (size, K)
        for n in range(N):
            pxt[c, n * Sx + ox:n * Sx + ox + size, n * K:(n + 1) * K] = at
    py_b = jnp.asarray(py, dtype=jnp.bfloat16)
    pxt_b = jnp.asarray(pxt, dtype=jnp.bfloat16)

    # Width-concatenate the B*C single-channel images, pad, cast to bf16.
    xw = jnp.transpose(x, (2, 0, 1, 3)).reshape(Sy, W)
    xw = jnp.pad(xw, ((0, Sy_p - Sy), (0, W_p - W)))
    xw_b = xw.astype(jnp.bfloat16)

    # ---- generation-aware VMEM budget & cutout grouping factor G -----------
    try:
        cap = int(pltpu.get_tpu_info().vmem_capacity_bytes)
    except Exception:
        cap = 128 * 1024 * 1024
    # Leave headroom for compiler scratch: ~112 MiB on v5e/v6e, ~48 MiB on v7x.
    budget = max(cap - 16 * 1024 * 1024, cap // 2)

    bytes_xw = 2 * Sy_p * W_p                     # bf16, single-buffered slab

    def step_bytes(g: int) -> int:
        b_py = 2 * (2 * g * Kp * Sy_p)            # bf16, double-buffered
        b_px = 2 * (2 * g * W_p * O_p)            # bf16, double-buffered
        b_out = 2 * (4 * g * Kp * O_p)            # f32, double-buffered
        b_t = 4 * g * Kp * W_p                    # f32 stage-1 intermediate
        return b_py + b_px + b_out + b_t

    def fits(g: int) -> bool:
        return bytes_xw + step_bytes(g) + (2 << 20) <= budget

    divisors = [d for d in range(1, cutn + 1) if cutn % d == 0]
    ok = [d for d in divisors if fits(d)] or [1]
    # Prefer keeping >=2 grid steps so "parallel" can use both v7x TensorCores.
    multi = [d for d in ok if cutn // d >= 2]
    G = max(multi) if (cutn >= 2 and multi) else max(ok)
    grid = (cutn // G,)

    needed = bytes_xw + step_bytes(G) + (4 << 20)
    vmem_limit = int(min(budget, max(needed, 32 * 1024 * 1024)))

    flops = 2 * cutn * Kp * Sy_p * W_p + 2 * cutn * Kp * W_p * O_p
    bytes_accessed = (2 * xw_b.size + 2 * py_b.size + 2 * pxt_b.size
                      + 4 * cutn * Kp * O_p)
    cost = pl.CostEstimate(flops=flops, transcendentals=0,
                           bytes_accessed=bytes_accessed)

    def _run(single_buffer_slab: bool):
        if single_buffer_slab:
            xw_spec = pl.BlockSpec((Sy_p, W_p), lambda g: (0, 0),
                                   pipeline_mode=pl.Buffered(1))
        else:
            xw_spec = pl.BlockSpec((Sy_p, W_p), lambda g: (0, 0))
        return pl.pallas_call(
            _make_kernel(G, Kp),
            out_shape=jax.ShapeDtypeStruct((cutn * Kp, O_p), x.dtype),
            grid=grid,
            in_specs=[
                xw_spec,                                           # image slab
                pl.BlockSpec((G * Kp, Sy_p), lambda g: (g, 0)),    # PY group
                pl.BlockSpec((G, W_p, O_p), lambda g: (g, 0, 0)),  # PXT_bd group
            ],
            out_specs=pl.BlockSpec((G * Kp, O_p), lambda g: (g, 0)),
            compiler_params=pltpu.CompilerParams(
                dimension_semantics=("parallel",),
                vmem_limit_bytes=vmem_limit),
            cost_estimate=cost,
        )(xw_b, py_b, pxt_b)

    try:
        out = _run(True)
    except Exception:
        # Fallback: default double-buffering of the constant slab.
        out = _run(False)

    # Strip padding and rearrange (pure layout plumbing, small vs. inputs):
    # (cutn*Kp, O_p) -> (cutn, K, N*K) -> (cutn, N, K, K) -> (cutn*B, C, K, K)
    out = out.reshape(cutn, Kp, O_p)[:, :K, :O]
    out = out.reshape(cutn, K, N, K).transpose(0, 2, 1, 3)
    return out.reshape(cutn * B, C, K, K)


class MakeCutoutsSG3:
    """JAX/Pallas port of the PyTorch MakeCutoutsSG3 module."""

    def __init__(self, cut_size, cutn, cut_pow=1.0, seed=0):
        self.cut_size = cut_size
        self.cutn = cutn
        self.cut_pow = cut_pow
        # TODO(synk): cutout sizes/offsets are sampled with a host-side numpy
        # RNG (deterministic per seed) instead of torch's device RNG; they only
        # parametrize pooling-matrix values, so all array shapes stay static.
        self._rng = np.random.default_rng(seed)
        self.last_params = None

    def _sample_params(self, side_y, side_x):
        max_size = min(side_x, side_y)
        min_size = min(side_x, side_y, self.cut_size)
        params = []
        for _ in range(self.cutn):
            u = float(self._rng.random())
            size = int(u ** self.cut_pow * (max_size - min_size) + min_size)
            offsetx = int(self._rng.integers(0, side_x - size + 1))
            offsety = int(self._rng.integers(0, side_y - size + 1))
            params.append((size, offsety, offsetx))
        return params

    def __call__(self, x):
        _, _, side_y, side_x = x.shape
        params = self._sample_params(side_y, side_x)
        self.last_params = params
        return make_cutouts_pallas(x, params, self.cut_size)


def _reference(x_np, params, cut_size):
    """Pure numpy reference: slice + adaptive_avg_pool2d via pooling matrices."""
    outs = []
    for (size, oy, ox) in params:
        a = _adaptive_pool_matrix(size, cut_size)              # (K, size)
        cut = x_np[:, :, oy:oy + size, ox:ox + size]
        pooled = np.einsum('ky,bcyx,jx->bckj', a, cut, a)
        outs.append(pooled.astype(np.float32))
    return np.concatenate(outs, axis=0)


if __name__ == "__main__":
    key = jax.random.PRNGKey(0)
    B, C, H, W = 2, 4, 16, 16
    x = jax.random.normal(key, (B, C, H, W), dtype=jnp.float32)

    cut_size, cutn, cut_pow = 8, 4, 1.0
    make_cutouts = MakeCutoutsSG3(cut_size, cutn, cut_pow, seed=0)

    out = make_cutouts(x)
    out = jax.block_until_ready(out)

    assert out.shape == (cutn * B, C, cut_size, cut_size), out.shape
    assert out.dtype == jnp.float32
    assert bool(jnp.all(jnp.isfinite(out)))

    ref = _reference(np.asarray(x), make_cutouts.last_params, cut_size)
    np.testing.assert_allclose(np.asarray(out), ref, rtol=2e-2, atol=2e-2)
    print("KERNEL_OK")
</pallas_src>

<mosaic_0001>
module attributes {stable_mosaic.version = 11 : i64} {
  func.func @kernel(%arg0: i32, %arg1: memref<16x128xbf16, #tpu.memory_space<vmem>>, %arg2: memref<16x16xbf16, #tpu.memory_space<vmem>>, %arg3: memref<2x128x128xbf16, #tpu.memory_space<vmem>>, %arg4: memref<16x128xf32, #tpu.memory_space<vmem>>) attributes {dimension_semantics = [#tpu.dimension_semantics<parallel>], iteration_bounds = array<i64: 2>, scalar_prefetch = 0 : i64, scratch_operands = 0 : i64, tpu.core_type = #tpu.core_type<tc>, window_params = [{pipeline_mode = #tpu.pipeline_mode<synchronous>, transform_indices = @transform_0, window_bounds = array<i64: 16, 128>}, {transform_indices = @transform_1, window_bounds = array<i64: 16, 16>}, {transform_indices = @transform_2, window_bounds = array<i64: 2, 128, 128>}, {transform_indices = @transform_3, window_bounds = array<i64: 16, 128>}]} {
    %c0 = arith.constant 0 : index
    %c0_0 = arith.constant 0 : index
    %0 = vector.load %arg1[%c0, %c0_0] : memref<16x128xbf16, #tpu.memory_space<vmem>>, vector<16x128xbf16>
    %c0_1 = arith.constant 0 : index
    %c0_2 = arith.constant 0 : index
    %1 = vector.load %arg2[%c0_1, %c0_2] : memref<16x16xbf16, #tpu.memory_space<vmem>>, vector<16x16xbf16>
    %cst = arith.constant dense<0.000000e+00> : vector<16x128xf32>
    %2 = tpu.matmul %1, %0, %cst {dimension_numbers = #tpu.dot_dimension_numbers<[1], [0], [0], [1], [0, 0, 1, 1], [], []>} : vector<16x16xbf16>, vector<16x128xbf16>, vector<16x128xf32> -> vector<16x128xf32>
    %3 = vector.extract_strided_slice %2 {offsets = [0, 0], sizes = [8, 128], strides = [1, 1]} : vector<16x128xf32> to vector<8x128xf32>
    %4 = arith.truncf %3 : vector<8x128xf32> to vector<8x128xbf16>
    %c0_3 = arith.constant 0 : index
    %c0_4 = arith.constant 0 : index
    %c0_5 = arith.constant 0 : index
    %5 = vector.load %arg3[%c0_3, %c0_4, %c0_5] : memref<2x128x128xbf16, #tpu.memory_space<vmem>>, vector<1x128x128xbf16>
    %6 = vector.shape_cast %5 : vector<1x128x128xbf16> to vector<128x128xbf16>
    %cst_6 = arith.constant dense<0.000000e+00> : vector<8x128xf32>
    %7 = tpu.matmul %4, %6, %cst_6 {dimension_numbers = #tpu.dot_dimension_numbers<[1], [0], [0], [1], [0, 0, 1, 1], [], []>} : vector<8x128xbf16>, vector<128x128xbf16>, vector<8x128xf32> -> vector<8x128xf32>
    %c0_7 = arith.constant 0 : index
    %c0_8 = arith.constant 0 : index
    %8 = vector.load %arg4[%c0_7, %c0_8] : memref<16x128xf32, #tpu.memory_space<vmem>>, vector<8x128xf32>
    tpu.vector_store %arg4[%c0_7, %c0_8], %7 {strides = array<i32>} : memref<16x128xf32, #tpu.memory_space<vmem>>, vector<8x128xf32>,
    %9 = vector.extract_strided_slice %2 {offsets = [8, 0], sizes = [8, 128], strides = [1, 1]} : vector<16x128xf32> to vector<8x128xf32>
    %10 = arith.truncf %9 : vector<8x128xf32> to vector<8x128xbf16>
    %c1 = arith.constant 1 : index
    %c0_9 = arith.constant 0 : index
    %c0_10 = arith.constant 0 : index
    %11 = vector.load %arg3[%c1, %c0_9, %c0_10] : memref<2x128x128xbf16, #tpu.memory_space<vmem>>, vector<1x128x128xbf16>
    %12 = vector.shape_cast %11 : vector<1x128x128xbf16> to vector<128x128xbf16>
    %cst_11 = arith.constant dense<0.000000e+00> : vector<8x128xf32>
    %13 = tpu.matmul %10, %12, %cst_11 {dimension_numbers = #tpu.dot_dimension_numbers<[1], [0], [0], [1], [0, 0, 1, 1], [], []>} : vector<8x128xbf16>, vector<128x128xbf16>, vector<8x128xf32> -> vector<8x128xf32>
    %c8 = arith.constant 8 : index
    %c0_12 = arith.constant 0 : index
    %14 = vector.load %arg4[%c8, %c0_12] : memref<16x128xf32, #tpu.memory_space<vmem>>, vector<8x128xf32>
    tpu.vector_store %arg4[%c8, %c0_12], %13 {strides = array<i32>} : memref<16x128xf32, #tpu.memory_space<vmem>>, vector<8x128xf32>,
    return
  }
  func.func @transform_0(%arg0: i32) -> (i32, i32) {
    %c0_i32 = arith.constant 0 : i32
    %c0_i32_0 = arith.constant 0 : i32
    %c0_i32_1 = arith.constant 0 : i32
    return %c0_i32, %c0_i32_0 : i32, i32
  }
  func.func @transform_1(%arg0: i32) -> (i32, i32) {
    %c0_i32 = arith.constant 0 : i32
    %c0_i32_0 = arith.constant 0 : i32
    return %arg0, %c0_i32 : i32, i32
  }
  func.func @transform_2(%arg0: i32) -> (i32, i32, i32) {
    %c0_i32 = arith.constant 0 : i32
    %c0_i32_0 = arith.constant 0 : i32
    %c0_i32_1 = arith.constant 0 : i32
    return %arg0, %c0_i32, %c0_i32_0 : i32, i32, i32
  }
  func.func @transform_3(%arg0: i32) -> (i32, i32) {
    %c0_i32 = arith.constant 0 : i32
    %c0_i32_0 = arith.constant 0 : i32
    return %arg0, %c0_i32 : i32, i32
  }
}

module attributes {stable_mosaic.version = 11 : i64} {
  func.func @kernel(%arg0: i32, %arg1: memref<16x128xbf16, #tpu.memory_space<vmem>>, %arg2: memref<16x16xbf16, #tpu.memory_space<vmem>>, %arg3: memref<2x128x128xbf16, #tpu.memory_space<vmem>>, %arg4: memref<16x128xf32, #tpu.memory_space<vmem>>) attributes {dimension_semantics = [#tpu.dimension_semantics<parallel>], iteration_bounds = array<i64: 2>, scalar_prefetch = 0 : i64, scratch_operands = 0 : i64, tpu.core_type = #tpu.core_type<tc>, window_params = [{pipeline_mode = #tpu.pipeline_mode<synchronous>, transform_indices = @transform_0, window_bounds = array<i64: 16, 128>}, {transform_indices = @transform_1, window_bounds = array<i64: 16, 16>}, {transform_indices = @transform_2, window_bounds = array<i64: 2, 128, 128>}, {transform_indices = @transform_3, window_bounds = array<i64: 16, 128>}]} {
    %c0 = arith.constant 0 : index
    %c0_0 = arith.constant 0 : index
    %0 = vector.load %arg1[%c0, %c0_0] : memref<16x128xbf16, #tpu.memory_space<vmem>>, vector<16x128xbf16>
    %c0_1 = arith.constant 0 : index
    %c0_2 = arith.constant 0 : index
    %1 = vector.load %arg2[%c0_1, %c0_2] : memref<16x16xbf16, #tpu.memory_space<vmem>>, vector<16x16xbf16>
    %cst = arith.constant dense<0.000000e+00> : vector<16x128xf32>
    %2 = tpu.matmul %1, %0, %cst {dimension_numbers = #tpu.dot_dimension_numbers<[1], [0], [0], [1], [0, 0, 1, 1], [], []>} : vector<16x16xbf16>, vector<16x128xbf16>, vector<16x128xf32> -> vector<16x128xf32>
    %3 = vector.extract_strided_slice %2 {offsets = [0, 0], sizes = [8, 128], strides = [1, 1]} : vector<16x128xf32> to vector<8x128xf32>
    %4 = arith.truncf %3 : vector<8x128xf32> to vector<8x128xbf16>
    %c0_3 = arith.constant 0 : index
    %c0_4 = arith.constant 0 : index
    %c0_5 = arith.constant 0 : index
    %5 = vector.load %arg3[%c0_3, %c0_4, %c0_5] : memref<2x128x128xbf16, #tpu.memory_space<vmem>>, vector<1x128x128xbf16>
    %6 = vector.shape_cast %5 : vector<1x128x128xbf16> to vector<128x128xbf16>
    %cst_6 = arith.constant dense<0.000000e+00> : vector<8x128xf32>
    %7 = tpu.matmul %4, %6, %cst_6 {dimension_numbers = #tpu.dot_dimension_numbers<[1], [0], [0], [1], [0, 0, 1, 1], [], []>} : vector<8x128xbf16>, vector<128x128xbf16>, vector<8x128xf32> -> vector<8x128xf32>
    %c0_7 = arith.constant 0 : index
    %c0_8 = arith.constant 0 : index
    %8 = vector.load %arg4[%c0_7, %c0_8] : memref<16x128xf32, #tpu.memory_space<vmem>>, vector<8x128xf32>
    tpu.vector_store %arg4[%c0_7, %c0_8], %7 {strides = array<i32>} : memref<16x128xf32, #tpu.memory_space<vmem>>, vector<8x128xf32>,
    %9 = vector.extract_strided_slice %2 {offsets = [8, 0], sizes = [8, 128], strides = [1, 1]} : vector<16x128xf32> to vector<8x128xf32>
    %10 = arith.truncf %9 : vector<8x128xf32> to vector<8x128xbf16>
    %c1 = arith.constant 1 : index
    %c0_9 = arith.constant 0 : index
    %c0_10 = arith.constant 0 : index
    %11 = vector.load %arg3[%c1, %c0_9, %c0_10] : memref<2x128x128xbf16, #tpu.memory_space<vmem>>, vector<1x128x128xbf16>
    %12 = vector.shape_cast %11 : vector<1x128x128xbf16> to vector<128x128xbf16>
    %cst_11 = arith.constant dense<0.000000e+00> : vector<8x128xf32>
    %13 = tpu.matmul %10, %12, %cst_11 {dimension_numbers = #tpu.dot_dimension_numbers<[1], [0], [0], [1], [0, 0, 1, 1], [], []>} : vector<8x128xbf16>, vector<128x128xbf16>, vector<8x128xf32> -> vector<8x128xf32>
    %c8 = arith.constant 8 : index
    %c0_12 = arith.constant 0 : index
    %14 = vector.load %arg4[%c8, %c0_12] : memref<16x128xf32, #tpu.memory_space<vmem>>, vector<8x128xf32>
    tpu.vector_store %arg4[%c8, %c0_12], %13 {strides = array<i32>} : memref<16x128xf32, #tpu.memory_space<vmem>>, vector<8x128xf32>,
    return
  }
  func.func @transform_0(%arg0: i32) -> (i32, i32) {
    %c0_i32 = arith.constant 0 : i32
    %c0_i32_0 = arith.constant 0 : i32
    %c0_i32_1 = arith.constant 0 : i32
    return %c0_i32, %c0_i32_0 : i32, i32
  }
  func.func @transform_1(%arg0: i32) -> (i32, i32) {
    %c0_i32 = arith.constant 0 : i32
    %c0_i32_0 = arith.constant 0 : i32
    return %arg0, %c0_i32 : i32, i32
  }
  func.func @transform_2(%arg0: i32) -> (i32, i32, i32) {
    %c0_i32 = arith.constant 0 : i32
    %c0_i32_0 = arith.constant 0 : i32
    %c0_i32_1 = arith.constant 0 : i32
    return %arg0, %c0_i32, %c0_i32_0 : i32, i32, i32
  }
  func.func @transform_3(%arg0: i32) -> (i32, i32) {
    %c0_i32 = arith.constant 0 : i32
    %c0_i32_0 = arith.constant 0 : i32
    return %arg0, %c0_i32 : i32, i32
  }
}

</mosaic_0001>

<bundles_post_ra>
// kernel: tpu_custom_call.1
= control target key start
LH: loop header
LB: loop body
LE: loop exit
PB: predicated region body
PF: predicated region fallthrough
CT: control target
= control target key end

     0   :  { %8 = vsyncpa [#allocation3], 0  ;;  %s1083_s0 = inlined_call_operand.vmem [shape: bf16[16,128], index: 0, kind: input, shape index: {}]   ;;  %s1084_s1 = inlined_call_operand.vmem [shape: bf16[32,16], index: 1, kind: input, shape index: {}]   ;;  %s1085_s2 = inlined_call_operand.hbm [shape: bf16[4,128,128], index: 2, kind: input, shape index: {}]   ;;  %s1086_s3 = inlined_call_operand.hbm [shape: f32[32,128], index: 3, kind: output, shape index: {}]  }
   0x1   :  { %10 = vsyncpa [#allocation3 + $0x1], 0 }
   0x2   :  { %11 = vsyncpa [#allocation4], 0 }
   0x3   :  { %13 = vsyncpa [#allocation4 + $0x1], 0  ;;  %s900_s12 = smov 0   ;;  %s902_s13 = smov 0  }
   0x4   :  { %s904_s14 = smov 0   ;;  %s906_s15 = smov 0  }
   0x5 LB: > { %s921_s16 = sadd.s32 4294967295, %s870_s15   ;;  %s587_s17 = sadd.s32 4294967294, %s870_s15   ;;  %s870_s15 = sphi %s906_s15, %s1101_s15   ;;  %s866_s14 = sphi %s904_s14, %s1100_s14   ;;  %s862_s13 = sphi %s902_s13, %s1099_s13   ;;  %s858_s12 = sphi %s900_s12, %s1098_s12  }
   0x6   : > { %s925_s18 = sadd.s32 1, %s870_s15   ;;  %s73_s19 = sadd.s32 1, %s866_s14 }
   0x7   : > { %s70_s20 = ssub.s32 %s870_s15, %s925_s18  ;;  %p80_p0 = scmp.ne.s32.totalorder %s866_s14, %s862_s13 }
   0x8   : > { %p71_p1 = scmp.eq.s32.totalorder %s70_s20, 0  ;;  %p81_p2 = scmp.eq.s32.totalorder %s870_s15, 0 }
   0x9   : > { %p86_p3 = scmp.ne.s32.totalorder %s862_s13, %s858_s12  ;;  %p87_p4 = scmp.eq.s32.totalorder %s921_s16, 0 }
   0xa   : > { %s937_s21 = scalar_select %p71_p1, %s866_s14, %s73_s19  }
   0xb   : > { %p939_p5 = por %p81_p2, %p80_p0  ;;  %p943_p6 = por %p87_p4, %p86_p3 }
   0xc   : > { %p110_p7 = scmp.eq.s32.totalorder %s921_s16, 1  ;;  %p116_p8 = scmp.eq.s32.totalorder %s587_s17, 1 }
   0xd   : > { %s1090_s23 = scalar_select %p943_p6, 1, 0 }
   0xe   : > { %p720_p10 = scmp.lt.s32.totalorder %s870_s15, 2  ;;  %p950_p11 = por %p110_p7, %p80_p0 }
   0xf   : > { %p954_p12 = por %p116_p8, %p86_p3  ;;  %s148_s26 = sand.u32 1, %s866_s14  }
  0x10   : > { %s1091_s24 = scalar_select %p950_p11, 1, 0 }
  0x11   : > { %s1092_s25 = scalar_select %p954_p12, 1, 0 }
  0x12   : > { %s640_s27 = sshll.u32 %s870_s15, 11  ;;  %s590_s28 = sshll.u32 %s148_s26, 7 }
  0x13   : > { %s963_s4 = scalar_lea.hbm %s1085_s2, %s640_s27  ;;  %s152_s5 = scalar_lea.vmem [#allocation2], %s590_s28 }
  0x14   : > { %s160_s6 = sshll.u32 %s152_s5, 4  ;;  %p967_p13 = pnand %p720_p10, %p939_p5  ;;  %s971_s6 = int_to_ptr.vmem [resolvable:$true] %s160_s6 }
  0x15   : > { %s973_s8 = scalar_lea.sflag [#allocation3], %s148_s26  ;;  %s778_s9 = scalar_lea.hbm %s963_s4, 2048 }
  0x16   : > { %p779_p0 = scmp.ne.s32.totalorder %s963_s4, %s778_s9  ;;  %p780_p1 = pneg %p967_p13 }
  0x17   : > { %s783_s17 = scalar_lea.hbm %s1085_s2, 4096  ;;  %p784_p4 = scmp.lt.s32.totalorder %s963_s4, %s1085_s2 }
  0x18   : > { %p781_p2 = pnand %p780_p1, %p779_p0  ;;  %p785_p5 = scmp.lt.s32.totalorder %s783_s17, %s778_s9 }
  0x1a   : > { %p782_p3 = pneg %p781_p2  ;;  %p786_p7 = por %p785_p5, %p784_p4 }
  0x1c   : > { %p787_p8 = pnand %p786_p7, %p782_p3 }
  0x1e   : > { %790 = shalt.err (!%p787_p8)
}
  0x1f   : > { %s791_s22 = scalar_lea.vmem %s971_s6, 2048  ;;  %s872_s26 = smov [#allocation2]  }
  0x20   : > { %p792_p10 = scmp.ne.s32.totalorder %s971_s6, %s791_s22  ;;  %s796_s27 = sshll.u32 %s872_s26, 4  ;;  %s797_s27 = int_to_ptr.vmem [resolvable:$false] %s796_s27 }
  0x21   : > { %s798_s28 = scalar_lea.vmem %s797_s27, 4096  ;;  %p799_p2 = scmp.lt.s32.totalorder %s971_s6, %s797_s27 }
  0x22   : > { %p794_p9 = pnand %p792_p10, %p780_p1  ;;  %p800_p12 = scmp.lt.s32.totalorder %s798_s28, %s791_s22 }
  0x24   : > { %p795_p0 = pneg %p794_p9  ;;  %p801_p11 = por %p800_p12, %p799_p2 }
  0x26   : > { %p802_p6 = pnand %p801_p11, %p795_p0 }
  0x28   : > { %805 = shalt.err (!%p802_p6)
}
  0x29   : > { %s873_s29 = smov 64   ;;  %s874_s30 = smov 4  }
  0x2a   : > { %715 = dma.hbm_to_vmem [thread:$0]  (!%p967_p13), %s963_s4, 2048, %s971_s6, %s973_s8, %s873_s29, %s873_s29, %s874_s30  }
  0x2b   : > { %p594_p9 = scmp.ge.s32.totalorder %s870_s15, 1  ;;  %p168_p1 = scmp.lt.s32.totalorder %s870_s15, 3 }
  0x2d   : > { %p169_p3 = pnand %p594_p9, %p168_p1 }
  0x2e   : > { %s997_s5 = sand.u32 (!%p169_p3), 1, %s862_s13   ;;  %p1094_p6 = scmp.ne.s32.totalorder (!%p169_p3), %s1090_s23, 0 }
  0x2f   : > { %172 = sbr.rel (%p169_p3) target bundleno = 468 (0x1d4), region = 32  ;;  %s595_s9 = sshll.u32 (!%p169_p3), %s997_s5, 7 }
  0x30   : > { %s175_s10 = scalar_lea.sflag (!%p169_p3), [#allocation3], %s997_s5  ;;  %s1001_s11 = scalar_lea.vmem (!%p169_p3), [#allocation2], %s595_s9 }
  0x34   : > { %849 = dma.done.wait (%p1094_p6), %s175_s10, 2048  }
  0x35   : > { %851 = vsyncadd (%p1094_p6), %s175_s10, 4294965248  ;;  %s597_s4 = sshll.u32 %s921_s16, 1  ;;  %v875_v0 = vmov 0.0   ;;  %vm876_vm0 = vmmov 0   ;;  %v760_v1 = vld [vmem:[%s1083_s0] sm:$0xff]   ;;  %vm230_vm1 = vcmask 130048  }
  0x36   : > { %662 = vmatprep.subr.bf16.mxu0 %v875_v0  ;;  %664 = vmatprep.mubr.msk.bf16.mxu0 %vm876_vm0, %v875_v0  ;;  %p207_p11 = scmp.lt.s32.totalorder %s597_s4, 3  ;;  %v762_v3 = vld [vmem:[%s1001_s11 + $0x38] sm:$0xff]   ;;  %v763_v4 = vld [vmem:[%s1001_s11 + $0x30] sm:$0xff]   ;;  %v765_v7 = vld [vmem:[%s1001_s11 + $0x28] sm:$0xff]   ;;  %s596_s20 = sshll.u32 %s997_s5, 4 }
  0x37   : > { %668 = vmatprep.subr.bf16.mxu1 %v875_v0  ;;  %684 = vmatprep.mubr.msk.bf16.mxu1 %vm876_vm0, %v875_v0  ;;  %v764_v5 = vld [vmem:[%s1001_s11 + $0x78] sm:$0xff]   ;;  %v766_v6 = vld [vmem:[%s1001_s11 + $0x70] sm:$0xff]   ;;  %v768_v8 = vld [vmem:[%s1001_s11 + $0x68] sm:$0xff]   ;;  %s205_s22 = scalar_lea.vmem [#allocation5], %s596_s20  ;;  %s641_s27 = sshll.u32 %s921_s16, 8 }
  0x38   : > { %s1103_s4 = smov (!%p207_p11, %s597_s4), 3  ;;  %663 = vmatpush3.bf16.msra.mxu0 %v760_v1  ;;  %669 = vmatpush3.bf16.msra.mxu1 %v762_v3  ;;  %v767_v9 = vld [vmem:[%s1001_s11 + $0x20] sm:$0xff]   ;;  %v769_v10 = vld [vmem:[%s1001_s11 + $0x18] sm:$0xff]   ;;  %v771_v13 = vld [vmem:[%s1001_s11 + $0x10] sm:$0xff]   ;;  %s502_s26 = sshll.u32 %s205_s22, 4  ;;  %s1035_s26 = int_to_ptr.vmem [resolvable:$true] %s502_s26 }
  0x39   : > { %s598_s6 = sshll.u32 %s1103_s4, 2  ;;  %688 = vmatprep.subr.bf16.mxu0 %v875_v0  ;;  %670 = vmatprep.subr.bf16.mxu1 %v875_v0  ;;  %v770_v11 = vld [vmem:[%s1001_s11 + $0x60] sm:$0xff]   ;;  %v772_v12 = vld [vmem:[%s1001_s11 + $0x58] sm:$0xff]   ;;  %v774_v14 = vld [vmem:[%s1001_s11 + $0x50] sm:$0xff]   ;;  %s1040_s30 = scalar_lea.hbm %s1086_s3, %s641_s27 }
  0x3a   : > { %s210_s8 = scalar_lea.vmem %s1084_s1, %s598_s6  ;;  %v773_v15 = vld [vmem:[%s1001_s11 + $0x8] sm:$0xff]   ;;  %v775_v16 = vld [vmem:[%s1001_s11] sm:$0xff]   ;;  %s489_s9 = scalar_lea.sflag [#allocation4], %s997_s5 }
  0x3b   : > { %v761_v2 = vld [vmem:[%s210_s8] sm:$0xff]   ;;  %v776_v17 = vld [vmem:[%s1001_s11 + $0x48] sm:$0xff]   ;;  %s806_s16 = scalar_lea.vmem %s1035_s26, 256  ;;  %p1095_p13 = scmp.ne.s32.totalorder %s1091_s24, 0 }
  0x3c   : > { %665 = vmatmul.mubr.msk.bf16.vlgmr.msra.gmra.mxu0 %vm230_vm1, %v761_v2  ;;  %671 = vmatpush3.bf16.msra.mxu1 %v763_v4  ;;  %v777_v18 = vld [vmem:[%s1001_s11 + $0x40] sm:$0xff]   ;;  %p807_p12 = scmp.ne.s32.totalorder %s1035_s26, %s806_s16  ;;  %s877_s10 = smov [#allocation5]  }
  0x3d   : > { %689 = vmatpush3.bf16.msra.mxu0 %v764_v5  ;;  %704 = vmatprep.mubr.msk.bf16.mxu0 %vm876_vm0, %v875_v0  ;;  %s810_s11 = sshll.u32 %s877_s10, 4  ;;  %s811_s11 = int_to_ptr.vmem [resolvable:$false] %s810_s11 }
  0x3e   : > { %690 = vmatprep.subr.bf16.mxu0 %v875_v0  ;;  %672 = vmatprep.subr.bf16.mxu1 %v875_v0  ;;  %p808_p4 = pnand %p807_p12, %p1095_p13  ;;  %s812_s4 = scalar_lea.vmem %s811_s11, 512 }
  0x3f   : > { %p813_p7 = scmp.lt.s32.totalorder %s1035_s26, %s811_s11  ;;  %p814_p8 = scmp.lt.s32.totalorder %s812_s4, %s806_s16 }
  0x40   : > { %673 = vmatpush3.bf16.msra.mxu1 %v765_v7  ;;  %p809_p5 = pneg %p808_p4 }
  0x41   : > { %691 = vmatpush3.bf16.msra.mxu0 %v766_v6  ;;  %674 = vmatprep.subr.bf16.mxu1 %v875_v0  ;;  %p815_p10 = por %p814_p8, %p813_p7 }
  0x42   : > { %692 = vmatprep.subr.bf16.mxu0 %v875_v0 }
  0x43   : > { %p816_p0 = pnand %p815_p10, %p809_p5 }
  0x44   : > { %675 = vmatpush3.bf16.msra.mxu1 %v767_v9 }
  0x45   : > { %693 = vmatpush3.bf16.msra.mxu0 %v768_v8  ;;  %676 = vmatprep.subr.bf16.mxu1 %v875_v0 }
  0x46   : > { %694 = vmatprep.subr.bf16.mxu0 %v875_v0 }
  0x48   : > { %677 = vmatpush3.bf16.msra.mxu1 %v769_v10 }
  0x49   : > { %695 = vmatpush3.bf16.msra.mxu0 %v770_v11  ;;  %678 = vmatprep.subr.bf16.mxu1 %v875_v0 }
  0x4a   : > { %696 = vmatprep.subr.bf16.mxu0 %v875_v0 }
  0x4c   : > { %679 = vmatpush3.bf16.msra.mxu1 %v771_v13 }
  0x4d   : > { %697 = vmatpush3.bf16.msra.mxu0 %v772_v12  ;;  %680 = vmatprep.subr.bf16.mxu1 %v875_v0 }
  0x4e   : > { %698 = vmatprep.subr.bf16.mxu0 %v875_v0 }
  0x50   : > { %681 = vmatpush3.bf16.msra.mxu1 %v773_v15 }
  0x51   : > { %699 = vmatpush3.bf16.msra.mxu0 %v774_v14  ;;  %682 = vmatprep.subr.bf16.mxu1 %v875_v0 }
  0x52   : > { %700 = vmatprep.subr.bf16.mxu0 %v875_v0 }
  0x54   : > { %683 = vmatpush3.bf16.msra.mxu1 %v775_v16 }
  0x55   : > { %701 = vmatpush3.bf16.msra.mxu0 %v776_v17 }
  0x56   : > { %702 = vmatprep.subr.bf16.mxu0 %v875_v0 }
  0x59   : > { %703 = vmatpush3.bf16.msra.mxu0 %v777_v18 }
  0xfc   : > { %v268_v19 = vpop.f32.mrf.mxu0 }
  0xfd   : > { %v275_v20 = vpack.c.bf16 %v268_v19, %v268_v19 }
  0xfe   : > { %v666_v21 = vpop.f32.mrf.mxu0 }
  0xff   : > { %685 = vmatmul.mubr.bf16.vlgmr.msra.gmra.mxu1 %v275_v20 }
 0x100   : > { %v271_v22 = vpop.f32.mrf.mxu0 }
 0x101   : > { %v381_v23 = vpack.c.bf16 %v271_v22, %v271_v22 }
 0x102   : > { %v667_v24 = vpop.f32.mrf.mxu0 }
 0x103   : > { %705 = vmatmul.mubr.bf16.vlgmr.msra.gmra.mxu0 %v381_v23 }
 0x1bf   : > { %v374_v25 = vpop.f32.mrf.mxu1 }
 0x1c0   : > { %380 = vst [vmem:[%s205_s22] sm:$0xff] %v374_v25 }
 0x1c1   : > { %v686_v26 = vpop.f32.mrf.mxu1 }
 0x1c3   : > { %v377_v27 = vpop.f32.mrf.mxu1  ;;  %v481_v28 = vpop.f32.mrf.mxu0 }
 0x1c4   : > { %487 = vst [vmem:[%s205_s22 + $0x8] sm:$0xff] %v481_v28 }
 0x1c5   : > { %v687_v29 = vpop.f32.mrf.mxu1  ;;  %v706_v30 = vpop.f32.mrf.mxu0 }
 0x1c6   : > { %819 = shalt.err (!%p816_p0)
}
 0x1c7   : > { %s820_s6 = scalar_lea.hbm %s1040_s30, 256  ;;  %s824_s8 = scalar_lea.hbm %s1086_s3, 512 }
 0x1c8   : > { %p821_p2 = scmp.ne.s32.totalorder %s1040_s30, %s820_s6  ;;  %p825_p3 = scmp.lt.s32.totalorder %s1040_s30, %s1086_s3 }
 0x1c9   : > { %p826_p6 = scmp.lt.s32.totalorder %s824_s8, %s820_s6 }
 0x1ca   : > { %p822_p9 = pnand %p821_p2, %p1095_p13 }
 0x1cb   : > { %p827_p11 = por %p826_p6, %p825_p3 }
 0x1cc   : > { %p823_p1 = pneg %p822_p9 }
 0x1ce   : > { %p828_p12 = pnand %p827_p11, %p823_p1 }
 0x1d0   : > { %831 = shalt.err (!%p828_p12)
}
 0x1d1   : > { %s878_s20 = smov 128   ;;  %s879_s22 = smov 8   ;;  %v484_v31 = vpop.f32.mrf.mxu0 }
 0x1d2   : > { %710 = dma.vmem_to_hbm [thread:$0]  (%p1095_p13), %s1035_s26, 256, %s1040_s30, %s489_s9, %s878_s20, %s878_s20, %s879_s22  }
 0x1d3   : > { %v707_v32 = vpop.f32.mrf.mxu0 }
 0x1d4 PF: > { %s517_s27 = sand.u32 1, %s858_s12   ;;  %p1096_p4 = scmp.ne.s32.totalorder %s1092_s25, 0 }
 0x1d5   : > { %p1097_p5 = scmp.ge.s32.totalorder %s870_s15, 2  ;;  %s518_s28 = scalar_lea.sflag [#allocation4], %s517_s27 }
 0x1d7   : > { %p717_p7 = pnand %p1097_p5, %p1096_p4 }
 0x1d9   : > { %p718_p8 = pneg %p717_p7 }
 0x1db   : > { %853 = dma.done.wait (%p718_p8), %s518_s28, 256  }
 0x1dc   : > { %855 = vsyncadd (%p718_p8), %s518_s28, 4294967040  ;;  %p16_p13 = scmp.ge.s32.totalorder %s925_s18, 4   ;;  %s1098_s12 = smov %s862_s13 }
 0x1dd   : > { %s1099_s13 = smov %s866_s14  ;;  %s1100_s14 = smov %s937_s21 }
 0x1de   : > { %s1101_s15 = smov %s925_s18  ;;  %18 = sbr.rel (!%p16_p13) target bundleno = 5 (0x5), region = 81 }
 0x1e3   :  { %523 = vsyncpa [#allocation3], 1 }
 0x1e4   :  { %525 = vsyncpa [#allocation3 + $0x1], 1 }
 0x1e5   :  { %526 = vsyncpa [#allocation4], 1 }
 0x1e6   :  { %528 = vsyncpa [#allocation4 + $0x1], 1 }

// kernel: tpu_custom_call.1
= control target key start
LH: loop header
LB: loop body
LE: loop exit
PB: predicated region body
PF: predicated region fallthrough
CT: control target
= control target key end

     0   :  { %8 = vsyncpa [#allocation3], 0  ;;  %s1083_s0 = inlined_call_operand.vmem [shape: bf16[16,128], index: 0, kind: input, shape index: {}]   ;;  %s1084_s1 = inlined_call_operand.vmem [shape: bf16[32,16], index: 1, kind: input, shape index: {}]   ;;  %s1085_s2 = inlined_call_operand.hbm [shape: bf16[4,128,128], index: 2, kind: input, shape index: {}]   ;;  %s1086_s3 = inlined_call_operand.hbm [shape: f32[32,128], index: 3, kind: output, shape index: {}]  }
   0x1   :  { %10 = vsyncpa [#allocation3 + $0x1], 0 }
   0x2   :  { %11 = vsyncpa [#allocation4], 0 }
   0x3   :  { %13 = vsyncpa [#allocation4 + $0x1], 0  ;;  %s900_s12 = smov 0   ;;  %s902_s13 = smov 0  }
   0x4   :  { %s904_s14 = smov 0   ;;  %s906_s15 = smov 0  }
   0x5 LB: > { %s921_s16 = sadd.s32 4294967295, %s870_s15   ;;  %s587_s17 = sadd.s32 4294967294, %s870_s15   ;;  %s870_s15 = sphi %s906_s15, %s1101_s15   ;;  %s866_s14 = sphi %s904_s14, %s1100_s14   ;;  %s862_s13 = sphi %s902_s13, %s1099_s13   ;;  %s858_s12 = sphi %s900_s12, %s1098_s12  }
   0x6   : > { %s925_s18 = sadd.s32 1, %s870_s15   ;;  %s73_s19 = sadd.s32 1, %s866_s14 }
   0x7   : > { %s70_s20 = ssub.s32 %s870_s15, %s925_s18  ;;  %p80_p0 = scmp.ne.s32.totalorder %s866_s14, %s862_s13 }
   0x8   : > { %p71_p1 = scmp.eq.s32.totalorder %s70_s20, 0  ;;  %p81_p2 = scmp.eq.s32.totalorder %s870_s15, 0 }
   0x9   : > { %p86_p3 = scmp.ne.s32.totalorder %s862_s13, %s858_s12  ;;  %p87_p4 = scmp.eq.s32.totalorder %s921_s16, 0 }
   0xa   : > { %s937_s21 = scalar_select %p71_p1, %s866_s14, %s73_s19  }
   0xb   : > { %p939_p5 = por %p81_p2, %p80_p0  ;;  %p943_p6 = por %p87_p4, %p86_p3 }
   0xc   : > { %p110_p7 = scmp.eq.s32.totalorder %s921_s16, 1  ;;  %p116_p8 = scmp.eq.s32.totalorder %s587_s17, 1 }
   0xd   : > { %s1090_s23 = scalar_select %p943_p6, 1, 0 }
   0xe   : > { %p720_p10 = scmp.lt.s32.totalorder %s870_s15, 2  ;;  %p950_p11 = por %p110_p7, %p80_p0 }
   0xf   : > { %p954_p12 = por %p116_p8, %p86_p3  ;;  %s148_s26 = sand.u32 1, %s866_s14  }
  0x10   : > { %s1091_s24 = scalar_select %p950_p11, 1, 0 }
  0x11   : > { %s1092_s25 = scalar_select %p954_p12, 1, 0 }
  0x12   : > { %s640_s27 = sshll.u32 %s870_s15, 11  ;;  %s590_s28 = sshll.u32 %s148_s26, 7 }
  0x13   : > { %s963_s4 = scalar_lea.hbm %s1085_s2, %s640_s27  ;;  %s152_s5 = scalar_lea.vmem [#allocation2], %s590_s28 }
  0x14   : > { %s160_s6 = sshll.u32 %s152_s5, 4  ;;  %p967_p13 = pnand %p720_p10, %p939_p5  ;;  %s971_s6 = int_to_ptr.vmem [resolvable:$true] %s160_s6 }
  0x15   : > { %s973_s8 = scalar_lea.sflag [#allocation3], %s148_s26  ;;  %s778_s9 = scalar_lea.hbm %s963_s4, 2048 }
  0x16   : > { %p779_p0 = scmp.ne.s32.totalorder %s963_s4, %s778_s9  ;;  %p780_p1 = pneg %p967_p13 }
  0x17   : > { %s783_s17 = scalar_lea.hbm %s1085_s2, 4096  ;;  %p784_p4 = scmp.lt.s32.totalorder %s963_s4, %s1085_s2 }
  0x18   : > { %p781_p2 = pnand %p780_p1, %p779_p0  ;;  %p785_p5 = scmp.lt.s32.totalorder %s783_s17, %s778_s9 }
  0x1a   : > { %p782_p3 = pneg %p781_p2  ;;  %p786_p7 = por %p785_p5, %p784_p4 }
  0x1c   : > { %p787_p8 = pnand %p786_p7, %p782_p3 }
  0x1e   : > { %790 = shalt.err (!%p787_p8)
}
  0x1f   : > { %s791_s22 = scalar_lea.vmem %s971_s6, 2048  ;;  %s872_s26 = smov [#allocation2]  }
  0x20   : > { %p792_p10 = scmp.ne.s32.totalorder %s971_s6, %s791_s22  ;;  %s796_s27 = sshll.u32 %s872_s26, 4  ;;  %s797_s27 = int_to_ptr.vmem [resolvable:$false] %s796_s27 }
  0x21   : > { %s798_s28 = scalar_lea.vmem %s797_s27, 4096  ;;  %p799_p2 = scmp.lt.s32.totalorder %s971_s6, %s797_s27 }
  0x22   : > { %p794_p9 = pnand %p792_p10, %p780_p1  ;;  %p800_p12 = scmp.lt.s32.totalorder %s798_s28, %s791_s22 }
  0x24   : > { %p795_p0 = pneg %p794_p9  ;;  %p801_p11 = por %p800_p12, %p799_p2 }
  0x26   : > { %p802_p6 = pnand %p801_p11, %p795_p0 }
  0x28   : > { %805 = shalt.err (!%p802_p6)
}
  0x29   : > { %s873_s29 = smov 64   ;;  %s874_s30 = smov 4  }
  0x2a   : > { %715 = dma.hbm_to_vmem [thread:$0]  (!%p967_p13), %s963_s4, 2048, %s971_s6, %s973_s8, %s873_s29, %s873_s29, %s874_s30  }
  0x2b   : > { %p594_p9 = scmp.ge.s32.totalorder %s870_s15, 1  ;;  %p168_p1 = scmp.lt.s32.totalorder %s870_s15, 3 }
  0x2d   : > { %p169_p3 = pnand %p594_p9, %p168_p1 }
  0x2e   : > { %s997_s5 = sand.u32 (!%p169_p3), 1, %s862_s13   ;;  %p1094_p6 = scmp.ne.s32.totalorder (!%p169_p3), %s1090_s23, 0 }
  0x2f   : > { %172 = sbr.rel (%p169_p3) target bundleno = 468 (0x1d4), region = 32  ;;  %s595_s9 = sshll.u32 (!%p169_p3), %s997_s5, 7 }
  0x30   : > { %s175_s10 = scalar_lea.sflag (!%p169_p3), [#allocation3], %s997_s5  ;;  %s1001_s11 = scalar_lea.vmem (!%p169_p3), [#allocation2], %s595_s9 }
  0x34   : > { %849 = dma.done.wait (%p1094_p6), %s175_s10, 2048  }
  0x35   : > { %851 = vsyncadd (%p1094_p6), %s175_s10, 4294965248  ;;  %s597_s4 = sshll.u32 %s921_s16, 1  ;;  %v875_v0 = vmov 0.0   ;;  %vm876_vm0 = vmmov 0   ;;  %v760_v1 = vld [vmem:[%s1083_s0] sm:$0xff]   ;;  %vm230_vm1 = vcmask 130048  }
  0x36   : > { %662 = vmatprep.subr.bf16.mxu0 %v875_v0  ;;  %664 = vmatprep.mubr.msk.bf16.mxu0 %vm876_vm0, %v875_v0  ;;  %p207_p11 = scmp.lt.s32.totalorder %s597_s4, 3  ;;  %v762_v3 = vld [vmem:[%s1001_s11 + $0x38] sm:$0xff]   ;;  %v763_v4 = vld [vmem:[%s1001_s11 + $0x30] sm:$0xff]   ;;  %v765_v7 = vld [vmem:[%s1001_s11 + $0x28] sm:$0xff]   ;;  %s596_s20 = sshll.u32 %s997_s5, 4 }
  0x37   : > { %668 = vmatprep.subr.bf16.mxu1 %v875_v0  ;;  %684 = vmatprep.mubr.msk.bf16.mxu1 %vm876_vm0, %v875_v0  ;;  %v764_v5 = vld [vmem:[%s1001_s11 + $0x78] sm:$0xff]   ;;  %v766_v6 = vld [vmem:[%s1001_s11 + $0x70] sm:$0xff]   ;;  %v768_v8 = vld [vmem:[%s1001_s11 + $0x68] sm:$0xff]   ;;  %s205_s22 = scalar_lea.vmem [#allocation5], %s596_s20  ;;  %s641_s27 = sshll.u32 %s921_s16, 8 }
  0x38   : > { %s1103_s4 = smov (!%p207_p11, %s597_s4), 3  ;;  %663 = vmatpush3.bf16.msra.mxu0 %v760_v1  ;;  %669 = vmatpush3.bf16.msra.mxu1 %v762_v3  ;;  %v767_v9 = vld [vmem:[%s1001_s11 + $0x20] sm:$0xff]   ;;  %v769_v10 = vld [vmem:[%s1001_s11 + $0x18] sm:$0xff]   ;;  %v771_v13 = vld [vmem:[%s1001_s11 + $0x10] sm:$0xff]   ;;  %s502_s26 = sshll.u32 %s205_s22, 4  ;;  %s1035_s26 = int_to_ptr.vmem [resolvable:$true] %s502_s26 }
  0x39   : > { %s598_s6 = sshll.u32 %s1103_s4, 2  ;;  %688 = vmatprep.subr.bf16.mxu0 %v875_v0  ;;  %670 = vmatprep.subr.bf16.mxu1 %v875_v0  ;;  %v770_v11 = vld [vmem:[%s1001_s11 + $0x60] sm:$0xff]   ;;  %v772_v12 = vld [vmem:[%s1001_s11 + $0x58] sm:$0xff]   ;;  %v774_v14 = vld [vmem:[%s1001_s11 + $0x50] sm:$0xff]   ;;  %s1040_s30 = scalar_lea.hbm %s1086_s3, %s641_s27 }
  0x3a   : > { %s210_s8 = scalar_lea.vmem %s1084_s1, %s598_s6  ;;  %v773_v15 = vld [vmem:[%s1001_s11 + $0x8] sm:$0xff]   ;;  %v775_v16 = vld [vmem:[%s1001_s11] sm:$0xff]   ;;  %s489_s9 = scalar_lea.sflag [#allocation4], %s997_s5 }
  0x3b   : > { %v761_v2 = vld [vmem:[%s210_s8] sm:$0xff]   ;;  %v776_v17 = vld [vmem:[%s1001_s11 + $0x48] sm:$0xff]   ;;  %s806_s16 = scalar_lea.vmem %s1035_s26, 256  ;;  %p1095_p13 = scmp.ne.s32.totalorder %s1091_s24, 0 }
  0x3c   : > { %665 = vmatmul.mubr.msk.bf16.vlgmr.msra.gmra.mxu0 %vm230_vm1, %v761_v2  ;;  %671 = vmatpush3.bf16.msra.mxu1 %v763_v4  ;;  %v777_v18 = vld [vmem:[%s1001_s11 + $0x40] sm:$0xff]   ;;  %p807_p12 = scmp.ne.s32.totalorder %s1035_s26, %s806_s16  ;;  %s877_s10 = smov [#allocation5]  }
  0x3d   : > { %689 = vmatpush3.bf16.msra.mxu0 %v764_v5  ;;  %704 = vmatprep.mubr.msk.bf16.mxu0 %vm876_vm0, %v875_v0  ;;  %s810_s11 = sshll.u32 %s877_s10, 4  ;;  %s811_s11 = int_to_ptr.vmem [resolvable:$false] %s810_s11 }
  0x3e   : > { %690 = vmatprep.subr.bf16.mxu0 %v875_v0  ;;  %672 = vmatprep.subr.bf16.mxu1 %v875_v0  ;;  %p808_p4 = pnand %p807_p12, %p1095_p13  ;;  %s812_s4 = scalar_lea.vmem %s811_s11, 512 }
  0x3f   : > { %p813_p7 = scmp.lt.s32.totalorder %s1035_s26, %s811_s11  ;;  %p814_p8 = scmp.lt.s32.totalorder %s812_s4, %s806_s16 }
  0x40   : > { %673 = vmatpush3.bf16.msra.mxu1 %v765_v7  ;;  %p809_p5 = pneg %p808_p4 }
  0x41   : > { %691 = vmatpush3.bf16.msra.mxu0 %v766_v6  ;;  %674 = vmatprep.subr.bf16.mxu1 %v875_v0  ;;  %p815_p10 = por %p814_p8, %p813_p7 }
  0x42   : > { %692 = vmatprep.subr.bf16.mxu0 %v875_v0 }
  0x43   : > { %p816_p0 = pnand %p815_p10, %p809_p5 }
  0x44   : > { %675 = vmatpush3.bf16.msra.mxu1 %v767_v9 }
  0x45   : > { %693 = vmatpush3.bf16.msra.mxu0 %v768_v8  ;;  %676 = vmatprep.subr.bf16.mxu1 %v875_v0 }
  0x46   : > { %694 = vmatprep.subr.bf16.mxu0 %v875_v0 }
  0x48   : > { %677 = vmatpush3.bf16.msra.mxu1 %v769_v10 }
  0x49   : > { %695 = vmatpush3.bf16.msra.mxu0 %v770_v11  ;;  %678 = vmatprep.subr.bf16.mxu1 %v875_v0 }
  0x4a   : > { %696 = vmatprep.subr.bf16.mxu0 %v875_v0 }
  0x4c   : > { %679 = vmatpush3.bf16.msra.mxu1 %v771_v13 }
  0x4d   : > { %697 = vmatpush3.bf16.msra.mxu0 %v772_v12  ;;  %680 = vmatprep.subr.bf16.mxu1 %v875_v0 }
  0x4e   : > { %698 = vmatprep.subr.bf16.mxu0 %v875_v0 }
  0x50   : > { %681 = vmatpush3.bf16.msra.mxu1 %v773_v15 }
  0x51   : > { %699 = vmatpush3.bf16.msra.mxu0 %v774_v14  ;;  %682 = vmatprep.subr.bf16.mxu1 %v875_v0 }
  0x52   : > { %700 = vmatprep.subr.bf16.mxu0 %v875_v0 }
  0x54   : > { %683 = vmatpush3.bf16.msra.mxu1 %v775_v16 }
  0x55   : > { %701 = vmatpush3.bf16.msra.mxu0 %v776_v17 }
  0x56   : > { %702 = vmatprep.subr.bf16.mxu0 %v875_v0 }
  0x59   : > { %703 = vmatpush3.bf16.msra.mxu0 %v777_v18 }
  0xfc   : > { %v268_v19 = vpop.f32.mrf.mxu0 }
  0xfd   : > { %v275_v20 = vpack.c.bf16 %v268_v19, %v268_v19 }
  0xfe   : > { %v666_v21 = vpop.f32.mrf.mxu0 }
  0xff   : > { %685 = vmatmul.mubr.bf16.vlgmr.msra.gmra.mxu1 %v275_v20 }
 0x100   : > { %v271_v22 = vpop.f32.mrf.mxu0 }
 0x101   : > { %v381_v23 = vpack.c.bf16 %v271_v22, %v271_v22 }
 0x102   : > { %v667_v24 = vpop.f32.mrf.mxu0 }
 0x103   : > { %705 = vmatmul.mubr.bf16.vlgmr.msra.gmra.mxu0 %v381_v23 }
 0x1bf   : > { %v374_v25 = vpop.f32.mrf.mxu1 }
 0x1c0   : > { %380 = vst [vmem:[%s205_s22] sm:$0xff] %v374_v25 }
 0x1c1   : > { %v686_v26 = vpop.f32.mrf.mxu1 }
 0x1c3   : > { %v377_v27 = vpop.f32.mrf.mxu1  ;;  %v481_v28 = vpop.f32.mrf.mxu0 }
 0x1c4   : > { %487 = vst [vmem:[%s205_s22 + $0x8] sm:$0xff] %v481_v28 }
 0x1c5   : > { %v687_v29 = vpop.f32.mrf.mxu1  ;;  %v706_v30 = vpop.f32.mrf.mxu0 }
 0x1c6   : > { %819 = shalt.err (!%p816_p0)
}
 0x1c7   : > { %s820_s6 = scalar_lea.hbm %s1040_s30, 256  ;;  %s824_s8 = scalar_lea.hbm %s1086_s3, 512 }
 0x1c8   : > { %p821_p2 = scmp.ne.s32.totalorder %s1040_s30, %s820_s6  ;;  %p825_p3 = scmp.lt.s32.totalorder %s1040_s30, %s1086_s3 }
 0x1c9   : > { %p826_p6 = scmp.lt.s32.totalorder %s824_s8, %s820_s6 }
 0x1ca   : > { %p822_p9 = pnand %p821_p2, %p1095_p13 }
 0x1cb   : > { %p827_p11 = por %p826_p6, %p825_p3 }
 0x1cc   : > { %p823_p1 = pneg %p822_p9 }
 0x1ce   : > { %p828_p12 = pnand %p827_p11, %p823_p1 }
 0x1d0   : > { %831 = shalt.err (!%p828_p12)
}
 0x1d1   : > { %s878_s20 = smov 128   ;;  %s879_s22 = smov 8   ;;  %v484_v31 = vpop.f32.mrf.mxu0 }
 0x1d2   : > { %710 = dma.vmem_to_hbm [thread:$0]  (%p1095_p13), %s1035_s26, 256, %s1040_s30, %s489_s9, %s878_s20, %s878_s20, %s879_s22  }
 0x1d3   : > { %v707_v32 = vpop.f32.mrf.mxu0 }
 0x1d4 PF: > { %s517_s27 = sand.u32 1, %s858_s12   ;;  %p1096_p4 = scmp.ne.s32.totalorder %s1092_s25, 0 }
 0x1d5   : > { %p1097_p5 = scmp.ge.s32.totalorder %s870_s15, 2  ;;  %s518_s28 = scalar_lea.sflag [#allocation4], %s517_s27 }
 0x1d7   : > { %p717_p7 = pnand %p1097_p5, %p1096_p4 }
 0x1d9   : > { %p718_p8 = pneg %p717_p7 }
 0x1db   : > { %853 = dma.done.wait (%p718_p8), %s518_s28, 256  }
 0x1dc   : > { %855 = vsyncadd (%p718_p8), %s518_s28, 4294967040  ;;  %p16_p13 = scmp.ge.s32.totalorder %s925_s18, 4   ;;  %s1098_s12 = smov %s862_s13 }
 0x1dd   : > { %s1099_s13 = smov %s866_s14  ;;  %s1100_s14 = smov %s937_s21 }
 0x1de   : > { %s1101_s15 = smov %s925_s18  ;;  %18 = sbr.rel (!%p16_p13) target bundleno = 5 (0x5), region = 81 }
 0x1e3   :  { %523 = vsyncpa [#allocation3], 1 }
 0x1e4   :  { %525 = vsyncpa [#allocation3 + $0x1], 1 }
 0x1e5   :  { %526 = vsyncpa [#allocation4], 1 }
 0x1e6   :  { %528 = vsyncpa [#allocation4 + $0x1], 1 }

</bundles_post_ra>
